<compile_context>
chip_gen: v6e
topology: v6e:2x2x1
jax: 0.10.0
libtpu: 0.0.40
codegen_flags: <defaults>
</compile_context>

<pallas_src>
import functools

import jax
import jax.numpy as jnp
from jax.experimental import pallas as pl
from jax.experimental.pallas import tpu as pltpu


def _round_up(x, m):
    return ((x + m - 1) // m) * m


def _fc_relu_kernel(x_ref, w_ref, b_ref, o_ref, acc_ref):
    # x_ref: (tm, tk)  bf16 activations tile
    # w_ref: (tk, tn)  bf16 weight tile, pre-transposed (n_in, n_out) layout
    # b_ref: (1,  tn)  f32 bias row for this N block
    # o_ref: (tm, tn)  f32 output tile
    # acc_ref: (tm, tn) f32 accumulator scratch (resident across the K axis)
    k = pl.program_id(2)

    @pl.when(k == 0)
    def _():
        # Seed the accumulator with the bias; epilogue becomes ReLU-only.
        acc_ref[...] = jnp.broadcast_to(b_ref[...], acc_ref.shape)

    # (tm, tk) @ (tk, tn) -> (tm, tn) on the MXU, f32 accumulation.
    acc_ref[...] += jnp.dot(
        x_ref[...], w_ref[...], preferred_element_type=jnp.float32
    )

    @pl.when(k == pl.num_programs(2) - 1)
    def _():
        o_ref[...] = jnp.maximum(acc_ref[...], 0.0).astype(o_ref.dtype)


@functools.partial(
    jax.jit, static_argnames=("n_out", "tm", "tn", "tk", "compute_dtype")
)
def _fc_relu_forward(x, w_kn, b_row, *, n_out, tm, tn, tk, compute_dtype):
    """relu(x @ w_kn + b_row)[:, :n_out] with x padded/cast per call only."""
    B, n_in = x.shape
    Kp, Np = w_kn.shape

    tm = min(tm, _round_up(B, 8))
    Bp = _round_up(B, tm)

    # Only x is padded per call; W / bias were prepared once at layer init.
    x_p = x
    if Bp != B or Kp != n_in:
        x_p = jnp.pad(x, ((0, Bp - B), (0, Kp - n_in)))
    x_p = x_p.astype(compute_dtype)

    grid = (Bp // tm, Np // tn, Kp // tk)

    in_bytes = jnp.dtype(compute_dtype).itemsize
    flops = 2 * Bp * Kp * Np
    # Count operand re-streaming: x is re-read per N block, W per M block.
    bytes_accessed = (
        Bp * Kp * in_bytes * (Np // tn)
        + Kp * Np * in_bytes * (Bp // tm)
        + Np * 4 * (Bp // tm)
        + Bp * Np * 4
    )

    # Double-buffered VMEM footprint (x, W, bias, out) + accumulator scratch.
    vmem_bytes = (
        2 * tm * tk * in_bytes
        + 2 * tk * tn * in_bytes
        + 2 * tn * 4
        + 2 * tm * tn * 4
        + tm * tn * 4
    )
    vmem_limit = int(
        min(48 * 1024 * 1024, max(32 * 1024 * 1024, (vmem_bytes * 3) // 2))
    )

    out = pl.pallas_call(
        _fc_relu_kernel,
        out_shape=jax.ShapeDtypeStruct((Bp, Np), jnp.float32),
        grid_spec=pltpu.PrefetchScalarGridSpec(
            num_scalar_prefetch=0,
            grid=grid,
            in_specs=[
                pl.BlockSpec((tm, tk), lambda i, j, k: (i, k)),  # x tile
                pl.BlockSpec((tk, tn), lambda i, j, k: (k, j)),  # W tile (K, N)
                pl.BlockSpec((1, tn), lambda i, j, k: (0, j)),   # bias row
            ],
            out_specs=pl.BlockSpec((tm, tn), lambda i, j, k: (i, j)),
            scratch_shapes=[pltpu.VMEM((tm, tn), jnp.float32)],
        ),
        compiler_params=pltpu.CompilerParams(
            dimension_semantics=("parallel", "parallel", "arbitrary"),
            vmem_limit_bytes=vmem_limit,
        ),
        cost_estimate=pl.CostEstimate(
            flops=flops, transcendentals=0, bytes_accessed=bytes_accessed
        ),
    )(x_p, w_kn, b_row)

    return out[:B, :n_out]


class BasicLayerPallas:
    """Pallas-TPU equivalent of basic_layer: relu(nn.Linear(n_in, n_out)(x)).

    Weight/bias prep (pad, transpose to (n_in, n_out), cast to bf16) happens
    ONCE here, mirroring PyTorch module construction; only x is padded per call.
    """

    def __init__(self, weight, bias, *, tm=512, tn=1024, tk=1024,
                 compute_dtype=jnp.bfloat16):
        n_out, n_in = weight.shape
        self.n_out = int(n_out)
        self.n_in = int(n_in)
        self.compute_dtype = compute_dtype

        n_out_p = _round_up(self.n_out, 128)
        n_in_p = _round_up(self.n_in, 128)

        tn = min(tn, n_out_p)
        tk = min(tk, n_in_p)
        # v7x megacore: keep >= 2 blocks along N when possible, so both
        # TensorCores get work even when the batch fits in one M block.
        if n_out_p >= 256 and tn >= n_out_p:
            tn = max(128, _round_up(n_out_p // 2, 128))

        Np = _round_up(n_out_p, tn)
        Kp = _round_up(n_in_p, tk)

        # One-time prep: transpose to (K, N), zero-pad, cast to compute dtype.
        w_kn = jnp.zeros((Kp, Np), dtype=compute_dtype)
        self.w_kn = w_kn.at[:self.n_in, :self.n_out].set(
            weight.T.astype(compute_dtype)
        )
        b_row = jnp.zeros((1, Np), dtype=jnp.float32)
        self.b_row = b_row.at[0, :self.n_out].set(bias.astype(jnp.float32))

        self.tm, self.tn, self.tk = int(tm), int(tn), int(tk)

    def __call__(self, x):
        return _fc_relu_forward(
            x, self.w_kn, self.b_row,
            n_out=self.n_out, tm=self.tm, tn=self.tn, tk=self.tk,
            compute_dtype=self.compute_dtype,
        )


def _ref(x, weight, bias):
    return jnp.maximum(x @ weight.T + bias, 0.0)


if __name__ == "__main__":
    key = jax.random.PRNGKey(0)

    # --- Test 1: small shapes implied by the module (single grid step). ---
    B, N_IN, N_OUT = 8, 32, 32
    kx, kw, kb, key = jax.random.split(key, 4)
    bound = 1.0 / (N_IN ** 0.5)
    weight = jax.random.uniform(kw, (N_OUT, N_IN), jnp.float32, -bound, bound)
    bias = jax.random.uniform(kb, (N_OUT,), jnp.float32, -bound, bound)
    x = jax.random.normal(kx, (B, N_IN), jnp.float32)

    layer = BasicLayerPallas(weight, bias)
    out = jax.block_until_ready(layer(x))
    assert out.shape == (B, N_OUT)
    # bf16 MXU operands, f32 accumulation -> loosened tolerance vs f32 ref.
    assert jnp.allclose(out, _ref(x, weight, bias), atol=2e-2, rtol=2e-2)

    # --- Test 2: non-multiple shapes with small tiles to exercise the tiled
    #     grid, K-accumulator, padding and epilogue paths. ---
    B2, N_IN2, N_OUT2 = 64, 384, 200
    kx2, kw2, kb2, key = jax.random.split(key, 4)
    bound2 = 1.0 / (N_IN2 ** 0.5)
    weight2 = jax.random.uniform(kw2, (N_OUT2, N_IN2), jnp.float32, -bound2, bound2)
    bias2 = jax.random.uniform(kb2, (N_OUT2,), jnp.float32, -bound2, bound2)
    x2 = jax.random.normal(kx2, (B2, N_IN2), jnp.float32)

    layer2 = BasicLayerPallas(weight2, bias2, tm=32, tn=128, tk=128)
    out2 = jax.block_until_ready(layer2(x2))
    assert out2.shape == (B2, N_OUT2)
    assert jnp.allclose(out2, _ref(x2, weight2, bias2), atol=2e-2, rtol=2e-2)

    print("KERNEL_OK")
</pallas_src>

<mosaic_0001>
module attributes {stable_mosaic.version = 11 : i64} {
  func.func @_fc_relu_kernel(%arg0: i32, %arg1: i32, %arg2: i32, %arg3: memref<8x128xbf16, #tpu.memory_space<vmem>>, %arg4: memref<128x128xbf16, #tpu.memory_space<vmem>>, %arg5: memref<1x128xf32, #tpu.memory_space<vmem>>, %arg6: memref<8x128xf32, #tpu.memory_space<vmem>>, %arg7: memref<8x128xf32, #tpu.memory_space<vmem>>) attributes {dimension_semantics = [#tpu.dimension_semantics<parallel>, #tpu.dimension_semantics<parallel>, #tpu.dimension_semantics<arbitrary>], iteration_bounds = array<i64: 1, 1, 1>, scalar_prefetch = 0 : i64, scratch_operands = 1 : i64, tpu.core_type = #tpu.core_type<tc>, window_params = [{transform_indices = @transform_0, window_bounds = array<i64: 8, 128>}, {transform_indices = @transform_1, window_bounds = array<i64: 128, 128>}, {transform_indices = @transform_2, window_bounds = array<i64: 1, 128>}, {transform_indices = @transform_3, window_bounds = array<i64: 8, 128>}]} {
    %c0_i32 = arith.constant 0 : i32
    %0 = arith.cmpi eq, %arg2, %c0_i32 : i32
    %1 = arith.extui %0 : i1 to i32
    %c0_i32_0 = arith.constant 0 : i32
    %2 = arith.cmpi ne, %1, %c0_i32_0 : i32
    scf.if %2 {
      %c0_10 = arith.constant 0 : index
      %c0_11 = arith.constant 0 : index
      %12 = vector.load %arg5[%c0_10, %c0_11] : memref<1x128xf32, #tpu.memory_space<vmem>>, vector<1x128xf32>
      %13 = vector.shape_cast %12 : vector<1x128xf32> to vector<1x128xf32>
      %14 = vector.broadcast %13 : vector<1x128xf32> to vector<8x128xf32>
      %c0_12 = arith.constant 0 : index
      %c0_13 = arith.constant 0 : index
      %15 = vector.load %arg7[%c0_12, %c0_13] : memref<8x128xf32, #tpu.memory_space<vmem>>, vector<8x128xf32>
      tpu.vector_store %arg7[%c0_12, %c0_13], %14 {strides = array<i32>} : memref<8x128xf32, #tpu.memory_space<vmem>>, vector<8x128xf32>,
    } else {
    }
    %c0 = arith.constant 0 : index
    %c0_1 = arith.constant 0 : index
    %3 = vector.load %arg7[%c0, %c0_1] : memref<8x128xf32, #tpu.memory_space<vmem>>, vector<8x128xf32>
    %c0_2 = arith.constant 0 : index
    %c0_3 = arith.constant 0 : index
    %4 = vector.load %arg3[%c0_2, %c0_3] : memref<8x128xbf16, #tpu.memory_space<vmem>>, vector<8x128xbf16>
    %c0_4 = arith.constant 0 : index
    %c0_5 = arith.constant 0 : index
    %5 = vector.load %arg4[%c0_4, %c0_5] : memref<128x128xbf16, #tpu.memory_space<vmem>>, vector<128x128xbf16>
    %cst = arith.constant dense<0.000000e+00> : vector<8x128xf32>
    %6 = tpu.matmul %4, %5, %cst {dimension_numbers = #tpu.dot_dimension_numbers<[1], [0], [0], [1], [0, 0, 1, 1], [], []>} : vector<8x128xbf16>, vector<128x128xbf16>, vector<8x128xf32> -> vector<8x128xf32>
    %7 = arith.addf %3, %6 : vector<8x128xf32>
    %c0_6 = arith.constant 0 : index
    %c0_7 = arith.constant 0 : index
    %8 = vector.load %arg7[%c0_6, %c0_7] : memref<8x128xf32, #tpu.memory_space<vmem>>, vector<8x128xf32>
    tpu.vector_store %arg7[%c0_6, %c0_7], %7 {strides = array<i32>} : memref<8x128xf32, #tpu.memory_space<vmem>>, vector<8x128xf32>,
    %c0_i32_8 = arith.constant 0 : i32
    %9 = arith.cmpi eq, %arg2, %c0_i32_8 : i32
    %10 = arith.extui %9 : i1 to i32
    %c0_i32_9 = arith.constant 0 : i32
    %11 = arith.cmpi ne, %10, %c0_i32_9 : i32
    scf.if %11 {
      %c0_10 = arith.constant 0 : index
      %c0_11 = arith.constant 0 : index
      %12 = vector.load %arg7[%c0_10, %c0_11] : memref<8x128xf32, #tpu.memory_space<vmem>>, vector<8x128xf32>
      %cst_12 = arith.constant 0.000000e+00 : f32
      %13 = vector.broadcast %cst_12 : f32 to vector<8x128xf32>
      %14 = arith.maximumf %12, %13 : vector<8x128xf32>
      %c0_13 = arith.constant 0 : index
      %c0_14 = arith.constant 0 : index
      %15 = vector.load %arg6[%c0_13, %c0_14] : memref<8x128xf32, #tpu.memory_space<vmem>>, vector<8x128xf32>
      tpu.vector_store %arg6[%c0_13, %c0_14], %14 {strides = array<i32>} : memref<8x128xf32, #tpu.memory_space<vmem>>, vector<8x128xf32>,
    } else {
    }
    return
  }
  func.func @transform_0(%arg0: i32, %arg1: i32, %arg2: i32) -> (i32, i32) {
    %c0_i32 = arith.constant 0 : i32
    return %arg0, %arg2 : i32, i32
  }
  func.func @transform_1(%arg0: i32, %arg1: i32, %arg2: i32) -> (i32, i32) {
    %c0_i32 = arith.constant 0 : i32
    return %arg2, %arg1 : i32, i32
  }
  func.func @transform_2(%arg0: i32, %arg1: i32, %arg2: i32) -> (i32, i32) {
    %c0_i32 = arith.constant 0 : i32
    %c0_i32_0 = arith.constant 0 : i32
    return %c0_i32, %arg1 : i32, i32
  }
  func.func @transform_3(%arg0: i32, %arg1: i32, %arg2: i32) -> (i32, i32) {
    %c0_i32 = arith.constant 0 : i32
    return %arg0, %arg1 : i32, i32
  }
}

</mosaic_0001>

<bundles_post_ra>
// kernel: _fc_relu_forward.1
= control target key start
LH: loop header
LB: loop body
LE: loop exit
PB: predicated region body
PF: predicated region fallthrough
CT: control target
= control target key end

     0   :  { %8 = vsyncpa [#allocation4], 0  ;;  %s305_s0 = inlined_call_operand.vmem [shape: bf16[8,128], index: 0, kind: input, shape index: {}]   ;;  %s306_s1 = inlined_call_operand.hbm [shape: bf16[128,128], index: 1, kind: input, shape index: {}]   ;;  %s307_s2 = inlined_call_operand.vmem [shape: f32[1,128], index: 2, kind: input, shape index: {}]   ;;  %s308_s3 = inlined_call_operand.hbm [shape: f32[8,128], index: 3, kind: output, shape index: {}]  }
   0x1   :  { %9 = vsyncpa [#allocation5], 0  ;;  %s267_s12 = smov [#allocation3]  }
   0x2   :  { %s17_s13 = sshll.u32 %s267_s12, 4  ;;  %s18_s13 = int_to_ptr.vmem [resolvable:$true] %s17_s13 }
   0x3   :  { %s231_s14 = scalar_lea.vmem %s18_s13, 1024  ;;  %p236_p1 = scmp.lt.s32.totalorder %s18_s13, %s18_s13 }
   0x4   :  { %p232_p0 = scmp.ne.s32.totalorder %s18_s13, %s231_s14  ;;  %p237_p2 = scmp.lt.s32.totalorder %s231_s14, %s231_s14 }
   0x6   :  { %p238_p3 = por %p237_p2, %p236_p1 }
   0x8   :  { %p239_p4 = pnand %p238_p3, %p232_p0 }
   0xa   :  { %242 = shalt.err (!%p239_p4)
}
   0xb   :  { %s268_s15 = smov 64   ;;  %s269_s16 = smov 4  }
   0xc   :  { %23 = dma.hbm_to_vmem [thread:$0]  %s306_s1, 1024, %s18_s13, [#allocation4], %s268_s15, %s268_s15, %s269_s16  }
   0xd   :  { %263 = dma.done.wait [#allocation4], 1024  }
   0xe   :  { %264 = vsyncadd [#allocation4], 4294966272  ;;  %v270_v0 = vmov 0.0   ;;  %vm271_vm0 = vmmov 0   ;;  %v215_v1 = vld [vmem:[#allocation3 + $0x38] sm:$0xff]   ;;  %v216_v2 = vld [vmem:[#allocation3 + $0x30] sm:$0xff]  }
   0xf   :  { %189 = vmatprep.subr.bf16.mxu0 %v270_v0  ;;  %205 = vmatprep.mubr.msk.bf16.mxu0 %vm271_vm0, %v270_v0  ;;  %v217_v3 = vld [vmem:[#allocation3 + $0x28] sm:$0xff]   ;;  %v218_v4 = vld [vmem:[#allocation3 + $0x20] sm:$0xff]   ;;  %v219_v5 = vld [vmem:[#allocation3 + $0x18] sm:$0xff]   ;;  %s272_s22 = smov [#allocation6]  }
  0x10   :  { %190 = vmatpush3.bf16.msra.mxu0 %v215_v1  ;;  %v220_v6 = vld [vmem:[#allocation3 + $0x10] sm:$0xff]   ;;  %v221_v7 = vld [vmem:[#allocation3 + $0x8] sm:$0xff]   ;;  %v222_v8 = vld [vmem:[#allocation3] sm:$0xff]   ;;  %s162_s23 = sshll.u32 %s272_s22, 4  ;;  %s163_s23 = int_to_ptr.vmem [resolvable:$true] %s162_s23 }
  0x11   :  { %191 = vmatprep.subr.bf16.mxu0 %v270_v0  ;;  %v43_v9 = vld [vmem:[%s305_s0] sm:$0xf]  ;;  %s243_s24 = scalar_lea.vmem %s163_s23, 128  ;;  %p248_p6 = scmp.lt.s32.totalorder %s163_s23, %s163_s23 }
  0x12   :  { %v171_v10 = vld [vmem:[%s307_s2] ss:$0 sm:$0xff]  ;;  %p244_p5 = scmp.ne.s32.totalorder %s163_s23, %s243_s24  ;;  %p249_p7 = scmp.lt.s32.totalorder %s243_s24, %s243_s24 }
  0x14   :  { %192 = vmatpush3.bf16.msra.mxu0 %v216_v2  ;;  %p250_p8 = por %p249_p7, %p248_p6 }
  0x15   :  { %193 = vmatprep.subr.bf16.mxu0 %v270_v0 }
  0x16   :  { %p251_p9 = pnand %p250_p8, %p244_p5 }
  0x18   :  { %194 = vmatpush3.bf16.msra.mxu0 %v217_v3 }
  0x19   :  { %195 = vmatprep.subr.bf16.mxu0 %v270_v0 }
  0x1c   :  { %196 = vmatpush3.bf16.msra.mxu0 %v218_v4 }
  0x1d   :  { %197 = vmatprep.subr.bf16.mxu0 %v270_v0 }
  0x20   :  { %198 = vmatpush3.bf16.msra.mxu0 %v219_v5 }
  0x21   :  { %199 = vmatprep.subr.bf16.mxu0 %v270_v0 }
  0x24   :  { %200 = vmatpush3.bf16.msra.mxu0 %v220_v6 }
  0x25   :  { %201 = vmatprep.subr.bf16.mxu0 %v270_v0 }
  0x28   :  { %202 = vmatpush3.bf16.msra.mxu0 %v221_v7 }
  0x29   :  { %203 = vmatprep.subr.bf16.mxu0 %v270_v0 }
  0x2c   :  { %204 = vmatpush3.bf16.msra.mxu0 %v222_v8 }
  0x2f   :  { %206 = vmatmul.mubr.bf16.vlgmr.msra.gmra.mxu0 %v43_v9 }
  0xef   :  { %v142_v11 = vpop.f32.mrf.mxu0 }
  0xf0   :  { %v148_v12 = vadd.f32 %v171_v10, %v142_v11 }
  0xf1   :  { %v207_v13 = vpop.f32.mrf.mxu0 }
  0xf2   :  { %v154_v14 = vmax.f32 %v148_v12, 0.0 }
  0xf3   :  { %v145_v15 = vpop.f32.mrf.mxu0 }
  0xf4   :  { %155 = vst [vmem:[#allocation6] sm:$0xff] %v154_v14 }
  0xf5   :  { %v208_v16 = vpop.f32.mrf.mxu0 }
  0xf6   :  { %254 = shalt.err (!%p251_p9)
}
  0xf7   :  { %165 = dma.vmem_to_hbm [thread:$0]  %s163_s23, 128, %s308_s3, [#allocation5]  }
  0xf8   :  { %265 = dma.done.wait [#allocation5], 128  }
  0xf9   :  { %266 = vsyncadd [#allocation5], 4294967168 }
  0xfa   :  { %169 = vsyncpa [#allocation4], 1 }
  0xfb   :  { %170 = vsyncpa [#allocation5], 1 }

</bundles_post_ra>
